<compile_context>
chip_gen: v5e
topology: v5e:2x2
jax: 0.10.0
libtpu: 0.0.40
codegen_flags: <defaults>
</compile_context>

<pallas_src>
import functools

import jax
import jax.numpy as jnp
from jax import lax
from jax.experimental import pallas as pl
from jax.experimental.pallas import tpu as pltpu

NEG_SLOPE = 0.01   # nn.LeakyReLU default negative_slope
BN_EPS = 1e-5      # nn.BatchNorm2d default eps


def _round_up(v, m):
    return ((v + m - 1) // m) * m


def _conv_bn_lrelu_kernel(w_ref, a_ref, shift_ref, o_ref):
    # [O, M]-oriented GEMM on the MXU (bf16 operands, f32 accumulation) with a
    # fused per-output-channel shift (conv bias + BatchNorm) and LeakyReLU
    # epilogue on the VPU.  BN scale is pre-folded into the weight columns.
    acc = jnp.dot(w_ref[...], a_ref[...], preferred_element_type=jnp.float32)
    y = acc + shift_ref[...]                      # (O, 1) broadcast over lanes
    o_ref[...] = jnp.where(y >= 0.0, y, NEG_SLOPE * y)


def conv_layer_forward(x, weight, bias, gamma, beta, run_mean, run_var,
                       *, stride, pad):
    N, C, H, W = x.shape
    O, _, KH, KW = weight.shape
    OH = (H + 2 * pad - KH) // stride + 1
    OW = (W + 2 * pad - KW) // stride + 1
    M = N * OH * OW
    K = KH * KW * C

    # ---- im2col glue (cheap): only the *small* input gets a leading-dim
    # permute; the expanded patches tensor is built directly in its final
    # layout (patch features on sublanes, spatial M on lanes).
    xc = jnp.transpose(x, (1, 0, 2, 3))                         # (C, N, H, W)
    xp = jnp.pad(xc, ((0, 0), (0, 0), (pad, pad), (pad, pad)))
    views = []
    for kh in range(KH):
        for kw in range(KW):
            views.append(xp[:, :, kh:kh + stride * OH:stride,
                                  kw:kw + stride * OW:stride])  # (C,N,OH,OW)
    a_t = jnp.stack(views, axis=0).reshape(K, M)    # feature order (kh, kw, c)

    # Weight flattened in matching (kh, kw, c) feature order; fold BN scale
    # into its rows, conv bias + BN mean/beta into `shift`.
    # TODO(synk): BatchNorm uses running statistics (eval mode); train-mode
    # batch statistics / running-stat updates are not computed.
    inv_std = gamma / jnp.sqrt(run_var + BN_EPS)
    w_flat = jnp.transpose(weight, (0, 2, 3, 1)).reshape(O, K)
    w_eff = w_flat * inv_std[:, None]                           # (O, K)
    shift = beta + (bias - run_mean) * inv_std                  # (O,)

    # ---- TPU-friendly padding.  O padded only to the bf16 sublane pack (16);
    # M (lane axis) padded to the tile.  Zero padding is exact for the GEMM.
    TM = 256
    Kp = _round_up(K, 128)
    Op = _round_up(O, 16)
    Mp = _round_up(M, TM)

    a_p = jnp.zeros((Kp, Mp), jnp.bfloat16).at[:K, :M].set(
        a_t.astype(jnp.bfloat16))
    w_p = jnp.zeros((Op, Kp), jnp.bfloat16).at[:O, :K].set(
        w_eff.astype(jnp.bfloat16))
    shift_p = jnp.zeros((Op, 1), jnp.float32).at[:O, 0].set(shift)

    cost = pl.CostEstimate(
        flops=2 * M * K * O,
        transcendentals=0,
        bytes_accessed=a_p.size * 2 + w_p.size * 2 + shift_p.size * 4
                       + Op * Mp * 4)

    # NOTE: weight / shift blocks are grid-constant; their double-buffered
    # VMEM cost is a few KiB here so default pipelining is kept.
    # TODO(synk): for production layer sizes (large C*KH*KW, O) add a K grid
    # axis marked "arbitrary" with an f32 VMEM accumulator and tile the weight
    # (a full-resident W does not survive v7x's 64 MiB VMEM), and fuse im2col
    # into the kernel via halo'd DMA of NHWC x to avoid the expanded-A HBM
    # round trip.
    out_p = pl.pallas_call(
        _conv_bn_lrelu_kernel,
        out_shape=jax.ShapeDtypeStruct((Op, Mp), jnp.float32),
        grid_spec=pltpu.PrefetchScalarGridSpec(
            num_scalar_prefetch=0,
            grid=(Mp // TM,),
            in_specs=[
                pl.BlockSpec((Op, Kp), lambda i: (0, 0)),   # weight (resident)
                pl.BlockSpec((Kp, TM), lambda i: (0, i)),   # im2col tile
                pl.BlockSpec((Op, 1), lambda i: (0, 0)),    # shift (resident)
            ],
            out_specs=pl.BlockSpec((Op, TM), lambda i: (0, i)),
        ),
        compiler_params=pltpu.CompilerParams(
            dimension_semantics=("parallel",)),
        cost_estimate=cost,
    )(w_p, a_p, shift_p)

    # Un-pad; restore NCHW with a cheap leading-dim permute (the lane/sublane
    # layout — the last two dims — is untouched).
    out = out_p[:O, :M].reshape(O, N, OH, OW).transpose(1, 0, 2, 3)
    return out


def _leaky(y):
    return jnp.where(y >= 0.0, y, NEG_SLOPE * y)


def _reference_f32(x, weight, bias, gamma, beta, run_mean, run_var,
                   stride, pad):
    y = lax.conv_general_dilated(
        x, weight, (stride, stride), ((pad, pad), (pad, pad)),
        dimension_numbers=("NCHW", "OIHW", "NCHW"),
        precision=lax.Precision.HIGHEST)
    y = y + bias[None, :, None, None]
    y = (y - run_mean[None, :, None, None]) / jnp.sqrt(
        run_var[None, :, None, None] + BN_EPS)
    y = y * gamma[None, :, None, None] + beta[None, :, None, None]
    return _leaky(y)


def _reference_bf16_operands(x, weight, bias, gamma, beta, run_mean, run_var,
                             stride, pad):
    # Same operand quantization as the kernel (bf16 operands, f32 accumulation,
    # BN scale folded into the weight) -> tight apples-to-apples check.
    inv_std = gamma / jnp.sqrt(run_var + BN_EPS)
    shift = beta + (bias - run_mean) * inv_std
    w_eff = (weight * inv_std[:, None, None, None]
             ).astype(jnp.bfloat16).astype(jnp.float32)
    x_q = x.astype(jnp.bfloat16).astype(jnp.float32)
    y = lax.conv_general_dilated(
        x_q, w_eff, (stride, stride), ((pad, pad), (pad, pad)),
        dimension_numbers=("NCHW", "OIHW", "NCHW"),
        precision=lax.Precision.HIGHEST)
    y = y + shift[None, :, None, None]
    return _leaky(y)


if __name__ == "__main__":
    # Module config: ConvLayer(in_channels=4, out_channels=8, kernel=3,
    #                          stride=1, pad=1, bn=True)
    N, Cin, H, W = 2, 4, 16, 16
    Cout, KSZ, STRIDE, PAD = 8, 3, 1, 1

    key = jax.random.PRNGKey(0)
    kx, kw, kb, kg, kbe = jax.random.split(key, 5)

    x = jax.random.normal(kx, (N, Cin, H, W), jnp.float32)
    weight = 0.1 * jax.random.normal(kw, (Cout, Cin, KSZ, KSZ), jnp.float32)
    bias = 0.1 * jax.random.normal(kb, (Cout,), jnp.float32)
    gamma = 1.0 + 0.1 * jax.random.normal(kg, (Cout,), jnp.float32)
    beta = 0.1 * jax.random.normal(kbe, (Cout,), jnp.float32)
    run_mean = jnp.zeros((Cout,), jnp.float32)   # BatchNorm2d init
    run_var = jnp.ones((Cout,), jnp.float32)     # BatchNorm2d init

    fwd = jax.jit(functools.partial(conv_layer_forward, stride=STRIDE, pad=PAD))
    out = jax.block_until_ready(fwd(x, weight, bias, gamma, beta,
                                    run_mean, run_var))

    assert out.shape == (N, Cout, H, W), out.shape

    ref_tight = _reference_bf16_operands(x, weight, bias, gamma, beta,
                                         run_mean, run_var, STRIDE, PAD)
    assert jnp.allclose(out, ref_tight, atol=5e-4, rtol=5e-4), (
        "mismatch vs bf16-operand reference: %e"
        % float(jnp.max(jnp.abs(out - ref_tight))))

    ref_f32 = _reference_f32(x, weight, bias, gamma, beta, run_mean, run_var,
                             STRIDE, PAD)
    assert jnp.allclose(out, ref_f32, atol=3e-2, rtol=3e-2), (
        "mismatch vs f32 reference: %e"
        % float(jnp.max(jnp.abs(out - ref_f32))))

    print("KERNEL_OK")
</pallas_src>

<mosaic_0001>
module attributes {stable_mosaic.version = 11 : i64} {
  func.func @_conv_bn_lrelu_kernel(%arg0: i32, %arg1: memref<16x128xbf16, #tpu.memory_space<vmem>>, %arg2: memref<128x256xbf16, #tpu.memory_space<vmem>>, %arg3: memref<16x1xf32, #tpu.memory_space<vmem>>, %arg4: memref<16x256xf32, #tpu.memory_space<vmem>>) attributes {dimension_semantics = [#tpu.dimension_semantics<parallel>], iteration_bounds = array<i64: 2>, scalar_prefetch = 0 : i64, scratch_operands = 0 : i64, tpu.core_type = #tpu.core_type<tc>, window_params = [{pipeline_mode = #tpu.pipeline_mode<synchronous>, transform_indices = @transform_0, window_bounds = array<i64: 16, 128>}, {transform_indices = @transform_1, window_bounds = array<i64: 128, 256>}, {pipeline_mode = #tpu.pipeline_mode<synchronous>, transform_indices = @transform_2, window_bounds = array<i64: 16, 1>}, {transform_indices = @transform_3, window_bounds = array<i64: 16, 256>}]} {
    %c0 = arith.constant 0 : index
    %c0_0 = arith.constant 0 : index
    %0 = vector.load %arg1[%c0, %c0_0] : memref<16x128xbf16, #tpu.memory_space<vmem>>, vector<16x128xbf16>
    %c0_1 = arith.constant 0 : index
    %c0_2 = arith.constant 0 : index
    %1 = vector.load %arg2[%c0_1, %c0_2] : memref<128x256xbf16, #tpu.memory_space<vmem>>, vector<128x256xbf16>
    %cst = arith.constant dense<0.000000e+00> : vector<16x256xf32>
    %2 = tpu.matmul %0, %1, %cst {dimension_numbers = #tpu.dot_dimension_numbers<[1], [0], [0], [1], [0, 0, 1, 1], [], []>} : vector<16x128xbf16>, vector<128x256xbf16>, vector<16x256xf32> -> vector<16x256xf32>
    %c0_3 = arith.constant 0 : index
    %c0_4 = arith.constant 0 : index
    %3 = vector.load %arg3[%c0_3, %c0_4] : memref<16x1xf32, #tpu.memory_space<vmem>>, vector<16x1xf32>
    %4 = vector.broadcast %3 : vector<16x1xf32> to vector<16x256xf32>
    %5 = arith.addf %2, %4 : vector<16x256xf32>
    %cst_5 = arith.constant 0.000000e+00 : f32
    %6 = vector.broadcast %cst_5 : f32 to vector<16x256xf32>
    %7 = arith.cmpf oge, %5, %6 : vector<16x256xf32>
    %cst_6 = arith.constant 0.00999999977 : f32
    %8 = vector.broadcast %cst_6 : f32 to vector<16x256xf32>
    %9 = arith.mulf %8, %5 : vector<16x256xf32>
    %10 = arith.select %7, %5, %9 : vector<16x256xi1>, vector<16x256xf32>
    %c0_7 = arith.constant 0 : index
    %c0_8 = arith.constant 0 : index
    %11 = vector.load %arg4[%c0_7, %c0_8] : memref<16x256xf32, #tpu.memory_space<vmem>>, vector<16x256xf32>
    tpu.vector_store %arg4[%c0_7, %c0_8], %10 {strides = array<i32>} : memref<16x256xf32, #tpu.memory_space<vmem>>, vector<16x256xf32>,
    return
  }
  func.func @transform_0(%arg0: i32) -> (i32, i32) {
    %c0_i32 = arith.constant 0 : i32
    %c0_i32_0 = arith.constant 0 : i32
    %c0_i32_1 = arith.constant 0 : i32
    return %c0_i32, %c0_i32_0 : i32, i32
  }
  func.func @transform_1(%arg0: i32) -> (i32, i32) {
    %c0_i32 = arith.constant 0 : i32
    %c0_i32_0 = arith.constant 0 : i32
    return %c0_i32, %arg0 : i32, i32
  }
  func.func @transform_2(%arg0: i32) -> (i32, i32) {
    %c0_i32 = arith.constant 0 : i32
    %c0_i32_0 = arith.constant 0 : i32
    %c0_i32_1 = arith.constant 0 : i32
    return %c0_i32, %c0_i32_0 : i32, i32
  }
  func.func @transform_3(%arg0: i32) -> (i32, i32) {
    %c0_i32 = arith.constant 0 : i32
    %c0_i32_0 = arith.constant 0 : i32
    return %c0_i32, %arg0 : i32, i32
  }
}

</mosaic_0001>

<bundles_post_ra>
// kernel: conv_layer_forward.1
= control target key start
LH: loop header
LB: loop body
LE: loop exit
PB: predicated region body
PF: predicated region fallthrough
CT: control target
= control target key end

     0   :  { %s685_s12 = smov 0   ;;  %s687_s13 = smov 0   ;;  %s810_s0 = inlined_call_operand.vmem [shape: bf16[16,128], index: 0, kind: input, shape index: {}]   ;;  %s811_s1 = inlined_call_operand.vmem [shape: bf16[128,512], index: 1, kind: input, shape index: {}]   ;;  %s812_s2 = inlined_call_operand.vmem [shape: f32[16,1], index: 2, kind: input, shape index: {}]   ;;  %s813_s3 = inlined_call_operand.vmem [shape: f32[16,512], index: 3, kind: output, shape index: {}]  }
   0x1   :  { %s689_s14 = smov 0  }
   0x2 LB: > { %s512_s15 = sadd.s32 4294967295, %s662_s14   ;;  %s702_s16 = sadd.s32 1, %s662_s14   ;;  %s662_s14 = sphi %s689_s14, %s817_s14   ;;  %s658_s13 = sphi %s687_s13, %s816_s13   ;;  %s654_s12 = sphi %s685_s12, %s815_s12  }
   0x3   : > { %s38_s17 = ssub.s32 %s662_s14, %s702_s16  ;;  %s41_s18 = sadd.s32 1, %s658_s13 }
   0x4   : > { %p39_p0 = scmp.eq.s32.totalorder %s38_s17, 0  ;;  %p48_p1 = scmp.ne.s32.totalorder %s658_s13, %s654_s12 }
   0x5   : > { %p49_p2 = scmp.eq.s32.totalorder %s662_s14, 0  ;;  %p99_p3 = scmp.eq.s32.totalorder %s512_s15, 1 }
   0x6   : > { %s713_s19 = scalar_select %p39_p0, %s658_s13, %s41_s18  }
   0x7   : > { %p50_p4 = por %p49_p2, %p48_p1  ;;  %p715_p5 = por %p99_p3, %p48_p1 }
   0x8   : > { %p515_p6 = scmp.ge.s32.totalorder %s662_s14, 2 }
   0xa   : > { %127 = sbr.rel (%p515_p6) target bundleno = 35 (0x23), region = 24 }
   0xf   : > { %130 = sbr.rel (!%p50_p4) target bundleno = 35 (0x23), region = 28  ;;  %s132_s21 = sand.u32 (%p50_p4), 1, %s658_s13  }
  0x10   : > { %s595_s22 = sshll.u32 (%p50_p4), %s662_s14, 3  ;;  %s516_s23 = sshll.u32 (%p50_p4), %s132_s21, 7 }
  0x11   : > { %s725_s26 = scalar_lea.vmem (%p50_p4), %s811_s1, %s595_s22  ;;  %s134_s27 = scalar_lea.vmem (%p50_p4), [#allocation2], %s516_s23 }
  0x12   : > { %v196_v0 = vld [vmem:[%s725_s26] sm:$0xff] (%p50_p4)  ;;  %v198_v1 = vld [vmem:[%s725_s26 + $0x10] sm:$0xff] (%p50_p4) }
  0x13   : > { %v200_v2 = vld [vmem:[%s725_s26 + $0x20] sm:$0xff] (%p50_p4)  ;;  %197 = vst [vmem:[%s134_s27] sm:$0xff] (%p50_p4), %v196_v0  ;;  %v202_v3 = vld [vmem:[%s725_s26 + $0x30] sm:$0xff] (%p50_p4) }
  0x14   : > { %199 = vst [vmem:[%s134_s27 + $0x8] sm:$0xff] %v198_v1  ;;  %v204_v4 = vld [vmem:[%s725_s26 + $0x40] sm:$0xff]  ;;  %v206_v5 = vld [vmem:[%s725_s26 + $0x50] sm:$0xff] }
  0x15   : > { %201 = vst [vmem:[%s134_s27 + $0x10] sm:$0xff] %v200_v2  ;;  %v208_v6 = vld [vmem:[%s725_s26 + $0x60] sm:$0xff]  ;;  %v210_v7 = vld [vmem:[%s725_s26 + $0x70] sm:$0xff] }
  0x16   : > { %203 = vst [vmem:[%s134_s27 + $0x18] sm:$0xff] %v202_v3  ;;  %v212_v8 = vld [vmem:[%s725_s26 + $0x80] sm:$0xff]  ;;  %v214_v9 = vld [vmem:[%s725_s26 + $0x90] sm:$0xff] }
  0x17   : > { %205 = vst [vmem:[%s134_s27 + $0x20] sm:$0xff] %v204_v4  ;;  %v216_v10 = vld [vmem:[%s725_s26 + $0xa0] sm:$0xff]  ;;  %v218_v11 = vld [vmem:[%s725_s26 + $0xb0] sm:$0xff] }
  0x18   : > { %207 = vst [vmem:[%s134_s27 + $0x28] sm:$0xff] %v206_v5  ;;  %v220_v12 = vld [vmem:[%s725_s26 + $0xc0] sm:$0xff]  ;;  %v222_v13 = vld [vmem:[%s725_s26 + $0xd0] sm:$0xff] }
  0x19   : > { %209 = vst [vmem:[%s134_s27 + $0x30] sm:$0xff] %v208_v6  ;;  %v224_v14 = vld [vmem:[%s725_s26 + $0xe0] sm:$0xff]  ;;  %v226_v15 = vld [vmem:[%s725_s26 + $0xf0] sm:$0xff] }
  0x1a   : > { %211 = vst [vmem:[%s134_s27 + $0x38] sm:$0xff] %v210_v7 }
  0x1b   : > { %213 = vst [vmem:[%s134_s27 + $0x40] sm:$0xff] %v212_v8 }
  0x1c   : > { %215 = vst [vmem:[%s134_s27 + $0x48] sm:$0xff] %v214_v9 }
  0x1d   : > { %217 = vst [vmem:[%s134_s27 + $0x50] sm:$0xff] %v216_v10 }
  0x1e   : > { %219 = vst [vmem:[%s134_s27 + $0x58] sm:$0xff] %v218_v11 }
  0x1f   : > { %221 = vst [vmem:[%s134_s27 + $0x60] sm:$0xff] %v220_v12 }
  0x20   : > { %223 = vst [vmem:[%s134_s27 + $0x68] sm:$0xff] %v222_v13 }
  0x21   : > { %225 = vst [vmem:[%s134_s27 + $0x70] sm:$0xff] %v224_v14 }
  0x22   : > { %227 = vst [vmem:[%s134_s27 + $0x78] sm:$0xff] %v226_v15 }
  0x23 PF: > { %p519_p7 = scmp.ge.s32.totalorder %s662_s14, 1  ;;  %p232_p8 = scmp.lt.s32.totalorder %s662_s14, 3 }
  0x25   : > { %p233_p9 = pnand %p519_p7, %p232_p8 }
  0x26   : > { %s239_s28 = sand.u32 (!%p233_p9), 1, %s654_s12  }
  0x27   : > { %236 = sbr.rel (%p233_p9) target bundleno = 227 (0xe3), region = 66  ;;  %s520_s29 = sshll.u32 (!%p233_p9), %s239_s28, 7 }
  0x28   : > { %s748_s30 = scalar_lea.vmem (!%p233_p9), [#allocation2], %s520_s29  ;;  %s521_s10 = sshll.u32 (!%p233_p9), %s239_s28, 5 }
  0x29   : > { %s260_s11 = scalar_lea.vmem (!%p233_p9), [#allocation3], %s521_s10 }
  0x2c   : > { %v584_v16 = vld [vmem:[%s748_s30 + $0x70] sm:$0xf]  ;;  %v612_v17 = vld [vmem:[%s748_s30 + $0x74] sm:$0xf0]  ;;  %v611_v18 = vld [vmem:[%s748_s30 + $0x74] sm:$0xf] }
  0x2d   : > { %v585_v19 = vor.u32 %v612_v17, %v584_v16  ;;  %v586_v20 = vld [vmem:[%s748_s30 + $0x78] sm:$0xf0]  ;;  %v576_v21 = vld [vmem:[%s748_s30 + $0x60] sm:$0xf]  ;;  %v610_v22 = vld [vmem:[%s748_s30 + $0x64] sm:$0xf0] }
  0x2e   : > { %v589_v23 = vor.u32 %v611_v18, %v586_v20  ;;  %v609_v24 = vld [vmem:[%s748_s30 + $0x64] sm:$0xf]  ;;  %v578_v25 = vld [vmem:[%s748_s30 + $0x68] sm:$0xf0]  ;;  %v577_v26 = vor.u32 %v610_v22, %v576_v21  ;;  %v568_v28 = vld [vmem:[%s748_s30 + $0x50] sm:$0xf] }
  0x2f   : > { %379 = vmatpush.bf16.msra.mxu0 %v585_v19  ;;  %v581_v27 = vor.u32 %v609_v24, %v578_v25  ;;  %v608_v29 = vld [vmem:[%s748_s30 + $0x54] sm:$0xf0]  ;;  %v607_v30 = vld [vmem:[%s748_s30 + $0x54] sm:$0xf]  ;;  %v570_v31 = vld [vmem:[%s748_s30 + $0x58] sm:$0xf0] }
  0x30   : > { %393 = vmatpush.bf16.msra.mxu1 %v589_v23  ;;  %v569_v32 = vor.u32 %v608_v29, %v568_v28  ;;  %v573_v33 = vor.u32 %v607_v30, %v570_v31  ;;  %v560_v34 = vld [vmem:[%s748_s30 + $0x40] sm:$0xf]  ;;  %v606_v35 = vld [vmem:[%s748_s30 + $0x44] sm:$0xf0]  ;;  %v605_v36 = vld [vmem:[%s748_s30 + $0x44] sm:$0xf] }
  0x31   : > { %v562_v37 = vld [vmem:[%s748_s30 + $0x48] sm:$0xf0]  ;;  %v561_v38 = vor.u32 %v606_v35, %v560_v34  ;;  %v664_v39 = vmov 0   ;;  %v281_v40 = vld [vmem:[%s812_s2] sm:$0xff]  ;;  %v552_v42 = vld [vmem:[%s748_s30 + $0x30] sm:$0xf] }
  0x32   : > { %639 = vset.pattern.permute.xlu0 %v664_v39  ;;  %v565_v41 = vor.u32 %v605_v36, %v562_v37  ;;  %v604_v43 = vld [vmem:[%s748_s30 + $0x34] sm:$0xf0]  ;;  %v603_v44 = vld [vmem:[%s748_s30 + $0x34] sm:$0xf]  ;;  %v554_v45 = vld [vmem:[%s748_s30 + $0x38] sm:$0xf0] }
  0x33   : > { %380 = vmatpush.bf16.msra.mxu0 %v577_v26  ;;  %285 = vperm.xlu0 %639, %v281_v40   ;;  %v553_v46 = vor.u32 %v604_v43, %v552_v42  ;;  %v557_v47 = vor.u32 %v603_v44, %v554_v45  ;;  %v544_v48 = vld [vmem:[%s748_s30 + $0x20] sm:$0xf]  ;;  %v602_v49 = vld [vmem:[%s748_s30 + $0x24] sm:$0xf0]  ;;  %v601_v50 = vld [vmem:[%s748_s30 + $0x24] sm:$0xf] }
  0x34   : > { %394 = vmatpush.bf16.msra.mxu1 %v581_v27  ;;  %v546_v51 = vld [vmem:[%s748_s30 + $0x28] sm:$0xf0]  ;;  %v545_v53 = vor.u32 %v602_v49, %v544_v48  ;;  %v536_v55 = vld [vmem:[%s748_s30 + $0x10] sm:$0xf]  ;;  %v600_v56 = vld [vmem:[%s748_s30 + $0x14] sm:$0xf0] }
  0x35   : > { %v282_v52 = vld [vmem:[%s812_s2 + $0x8] sm:$0xff]  ;;  %v549_v54 = vor.u32 %v601_v50, %v546_v51  ;;  %v599_v57 = vld [vmem:[%s748_s30 + $0x14] sm:$0xf]  ;;  %v538_v58 = vld [vmem:[%s748_s30 + $0x18] sm:$0xf0]  ;;  %v537_v59 = vor.u32 %v600_v56, %v536_v55  ;;  %s613_s12 = sshll.u32 (%p715_p5), %s512_s15, 4 }
  0x36   : > { %v541_v60 = vor.u32 %v599_v57, %v538_v58  ;;  %v528_v61 = vld [vmem:[%s748_s30] sm:$0xf]  ;;  %v598_v62 = vld [vmem:[%s748_s30 + $0x4] sm:$0xf0]  ;;  %v597_v63 = vld [vmem:[%s748_s30 + $0x4] sm:$0xf]  ;;  %s432_s21 = scalar_lea.vmem (%p715_p5), %s813_s3, %s613_s12 }
  0x37   : > { %381 = vmatpush.bf16.msra.mxu0 %v569_v32  ;;  %v530_v0 = vld [vmem:[%s748_s30 + $0x8] sm:$0xf0]  ;;  %v529_v1 = vor.u32 %v598_v62, %v528_v61  ;;  %v596_v3 = vld [vmem:[%s810_s0] sm:$0xff] }
  0x38   : > { %395 = vmatpush.bf16.msra.mxu1 %v573_v33  ;;  %v533_v2 = vor.u32 %v597_v63, %v530_v0 }
  0x3b   : > { %382 = vmatpush.bf16.msra.mxu0 %v561_v38  ;;  %290 = vperm.xlu0 %639, %v282_v52  }
  0x3c   : > { %396 = vmatpush.bf16.msra.mxu1 %v565_v41 }
  0x3f   : > { %383 = vmatpush.bf16.msra.mxu0 %v553_v46 }
  0x40   : > { %397 = vmatpush.bf16.msra.mxu1 %v557_v47 }
  0x43   : > { %384 = vmatpush.bf16.msra.mxu0 %v545_v53 }
  0x44   : > { %398 = vmatpush.bf16.msra.mxu1 %v549_v54 }
  0x47   : > { %385 = vmatpush.bf16.msra.mxu0 %v537_v59 }
  0x48   : > { %399 = vmatpush.bf16.msra.mxu1 %v541_v60 }
  0x4b   : > { %386 = vmatpush.bf16.msra.mxu0 %v529_v1 }
  0x4c   : > { %400 = vmatpush.bf16.msra.mxu1 %v533_v2 }
  0x4e   : > { %387 = vmatmul.bf16.vlgmr.msra.gmra.mxu0 %v596_v3 }
  0x4f   : > { %401 = vmatmul.bf16.vlgmr.msra.gmra.mxu1 %v596_v3 }
  0xa5   : > { %v286_v4 = vpop.permute.xlu0 %285 }
  0xad   : > { %v291_v13 = vpop.permute.xlu0 %290 }
  0xcb   : > { %v388_v5 = vpop.f32.mrf.mxu0 }
  0xcc   : > { %v389_v6 = vadd.f32 %v388_v5, %v286_v4  ;;  %v402_v7 = vpop.f32.mrf.mxu1 }
  0xcd   : > { %v403_v8 = vadd.f32 %v402_v7, %v286_v4 }
  0xce   : > { %vm407_vm0 = vcmp.ge.f32.partialorder %v389_v6, 0.0  ;;  %v411_v9 = vmul.f32 0.01, %v389_v6 }
  0xcf   : > { %vm408_vm1 = vcmp.ge.f32.partialorder %v403_v8, 0.0  ;;  %v412_v10 = vmul.f32 0.01, %v403_v8 }
  0xd0   : > { %v415_v11 = vsel %vm407_vm0, %v389_v6, %v411_v9 }
  0xd1   : > { %419 = vst [vmem:[%s260_s11] sm:$0xff] %v415_v11  ;;  %v416_v12 = vsel %vm408_vm1, %v403_v8, %v412_v10 }
  0xd2   : > { %420 = vst [vmem:[%s260_s11 + $0x8] sm:$0xff] %v416_v12 }
  0xd3   : > { %v390_v14 = vpop.f32.mrf.mxu0 }
  0xd4   : > { %v391_v15 = vadd.f32 %v390_v14, %v291_v13  ;;  %v404_v16 = vpop.f32.mrf.mxu1 }
  0xd5   : > { %v405_v17 = vadd.f32 %v404_v16, %v291_v13 }
  0xd6   : > { %vm409_vm2 = vcmp.ge.f32.partialorder %v391_v15, 0.0  ;;  %v413_v18 = vmul.f32 0.01, %v391_v15  ;;  %429 = sbr.rel (!%p715_p5) target bundleno = 227 (0xe3), region = 74 }
  0xd7   : > { %vm410_vm3 = vcmp.ge.f32.partialorder %v405_v17, 0.0  ;;  %v414_v19 = vmul.f32 0.01, %v405_v17 }
  0xd8   : > { %v417_v20 = vsel %vm409_vm2, %v391_v15, %v413_v18  ;;  %v445_v22 = vld [vmem:[%s260_s11] sm:$0xff] (%p715_p5) }
  0xd9   : > { %421 = vst [vmem:[%s260_s11 + $0x10] sm:$0xff] %v417_v20  ;;  %v418_v21 = vsel %vm410_vm3, %v405_v17, %v414_v19  ;;  %v447_v23 = vld [vmem:[%s260_s11 + $0x8] sm:$0xff] (%p715_p5) }
  0xda   : > { %422 = vst [vmem:[%s260_s11 + $0x18] sm:$0xff] %v418_v21 }
  0xdb   : > { %446 = vst [vmem:[%s432_s21] sm:$0xff] %v445_v22 }
  0xdc   : > { %448 = vst [vmem:[%s432_s21 + $0x8] sm:$0xff] %v447_v23 }
  0xe0   : > { %v449_v24 = vld [vmem:[%s260_s11 + $0x10] sm:$0xff] }
  0xe1   : > { %v451_v25 = vld [vmem:[%s260_s11 + $0x18] sm:$0xff]  ;;  %450 = vst [vmem:[%s432_s21 + $0x20] sm:$0xff] %v449_v24 }
  0xe2   : > { %452 = vst [vmem:[%s432_s21 + $0x28] sm:$0xff] %v451_v25 }
  0xe3 PF: > { %p10_p10 = scmp.ge.s32.totalorder %s702_s16, 4   ;;  %s815_s12 = smov %s658_s13 }
  0xe4   : > { %s816_s13 = smov %s713_s19  ;;  %s817_s14 = smov %s702_s16 }
  0xe5   :  { %12 = sbr.rel (!%p10_p10) target bundleno = 2 (0x2), region = 128 }

</bundles_post_ra>
